<compile_context>
chip_gen: v5e
topology: v5e:2x2
jax: 0.10.0
libtpu: 0.0.40
codegen_flags: <defaults>
</compile_context>

<pallas_src>
import jax
import jax.numpy as jnp
from jax.experimental import pallas as pl
from jax.experimental.pallas import tpu as pltpu

# ---- Model dimensions implied by the PyTorch module ----
K = 21                         # conv kernel size
H = W = 28                     # input spatial (28x28 since fc1 expects 192 = 3*8*8)
OH = OW = H - K + 1            # 8
C_OUT = 3                      # conv out channels
FC1_IN = C_OUT * OH * OW       # 192
FC1_OUT = 128
FC2_OUT = 10
FC2_PAD = 128                  # lane-dense padded fc2 width
MAX_TILE_B = 2048              # batch tile (VMEM ~15 MB at 2048, safe on v7x 64 MiB)


# ------------------------- Fused Pallas kernel -------------------------

def fused_mlp_kernel(x_ref, w0_ref, b0_ref, w1_ref, b1_ref, w2_ref, b2_ref, o_ref):
    """conv(as dense matmul)+ReLU -> fc1+ReLU -> fc2, all in VMEM.

    x_ref:  (tile_b, 784) bf16   raw flattened images
    w0_ref: (784, 192)   bf16    conv lowered to dense matrix, NCHW-flatten col order
    b0_ref: (1, 192)     f32
    w1_ref: (192, 128) bf16, b1_ref: (1, 128) f32
    w2_ref: (128, 128) bf16, b2_ref: (1, 128) f32   (zero-padded beyond col 10)
    o_ref:  (tile_b, 128) f32    lane-dense output (cols 10.. are zero)
    """
    h0 = jnp.dot(x_ref[...], w0_ref[...], preferred_element_type=jnp.float32)
    h0 = jnp.maximum(h0 + b0_ref[...], 0.0)
    h1 = jnp.dot(h0.astype(jnp.bfloat16), w1_ref[...],
                 preferred_element_type=jnp.float32)
    h1 = jnp.maximum(h1 + b1_ref[...], 0.0)
    o_ref[...] = (
        jnp.dot(h1.astype(jnp.bfloat16), w2_ref[...],
                preferred_element_type=jnp.float32)
        + b2_ref[...]
    )


# ------------------------- One-time parameter prep (outside jit) ------------

def prepare_params(params):
    """Lower PyTorch-layout params to kernel layout (bf16 weights). Run ONCE."""
    wc, bc, w1, b1, w2, b2 = params

    # Conv as dense matmul: W0[h_in*28 + w_in, c*64 + oh*8 + ow] = wc[c,0,kh,kw]
    # with h_in = oh + kh, w_in = ow + kw.  Column order == PyTorch Flatten order,
    # so fc1's weight needs no row permutation.
    c, oh, ow, kh, kw = jnp.meshgrid(
        jnp.arange(C_OUT), jnp.arange(OH), jnp.arange(OW),
        jnp.arange(K), jnp.arange(K), indexing="ij")
    rows = (oh + kh) * W + (ow + kw)
    cols = c * (OH * OW) + oh * OW + ow
    w0 = (
        jnp.zeros((H * W, FC1_IN), jnp.float32)
        .at[rows.ravel(), cols.ravel()]
        .set(wc[c, 0, kh, kw].ravel())
    )
    b0 = jnp.repeat(bc.astype(jnp.float32), OH * OW).reshape(1, FC1_IN)

    w1k = w1.T.astype(jnp.float32)                       # (192, 128)
    b1k = b1.reshape(1, FC1_OUT).astype(jnp.float32)

    # fc2 zero-padded to 128 output lanes -> unmasked lane-dense stores.
    w2k = jnp.zeros((FC1_OUT, FC2_PAD), jnp.float32).at[:, :FC2_OUT].set(w2.T)
    b2k = jnp.zeros((1, FC2_PAD), jnp.float32).at[0, :FC2_OUT].set(b2)

    # bf16 weights for native MXU rate + halved DMA bytes; biases stay f32.
    return (w0.astype(jnp.bfloat16), b0,
            w1k.astype(jnp.bfloat16), b1k,
            w2k.astype(jnp.bfloat16), b2k)


# ------------------------- Forward (jit-able) --------------------------------

def _choose_tile_b(B):
    """Batch tile: >=2 grid steps when possible (v7x megacore), sublane-aligned."""
    if B <= 8:
        return B                                   # single full-array tile
    half = (B + 1) // 2                            # aim for >= 2 grid steps
    half = ((half + 7) // 8) * 8                   # round up to sublane multiple
    return min(MAX_TILE_B, half)


def simple_conv_model2_padded(x, prepared):
    """x: (B, 1, 28, 28) NCHW; returns lane-dense (B, 128) f32 (cols 10.. zero).

    Downstream consumers should prefer this padded output inside a larger jit so
    the [:, :10] slice fuses with their next op instead of a standalone HBM pass.
    """
    w0, b0, w1, b1, w2, b2 = prepared
    B = x.shape[0]
    x_flat = x.reshape(B, H * W)
    if x_flat.dtype != jnp.bfloat16:
        x_flat = x_flat.astype(jnp.bfloat16)       # halve the dominant HBM stream

    tile_b = _choose_tile_b(B)
    grid = (pl.cdiv(B, tile_b),)

    flops = 2 * B * (H * W * FC1_IN + FC1_IN * FC1_OUT + FC1_OUT * FC2_PAD)
    bytes_accessed = (
        2 * B * H * W + 4 * B * FC2_PAD                               # x (bf16), out (f32)
        + 2 * (H * W * FC1_IN + FC1_IN * FC1_OUT + FC1_OUT * FC2_PAD) # bf16 weights
        + 4 * (FC1_IN + FC1_OUT + FC2_PAD)                            # f32 biases
    )

    return pl.pallas_call(
        fused_mlp_kernel,
        grid=grid,
        in_specs=[
            pl.BlockSpec((tile_b, H * W), lambda i: (i, 0)),      # images (tiled)
            pl.BlockSpec((H * W, FC1_IN), lambda i: (0, 0)),      # resident weights
            pl.BlockSpec((1, FC1_IN), lambda i: (0, 0)),
            pl.BlockSpec((FC1_IN, FC1_OUT), lambda i: (0, 0)),
            pl.BlockSpec((1, FC1_OUT), lambda i: (0, 0)),
            pl.BlockSpec((FC1_OUT, FC2_PAD), lambda i: (0, 0)),
            pl.BlockSpec((1, FC2_PAD), lambda i: (0, 0)),
        ],
        out_specs=pl.BlockSpec((tile_b, FC2_PAD), lambda i: (i, 0)),
        out_shape=jax.ShapeDtypeStruct((B, FC2_PAD), jnp.float32),
        compiler_params=pltpu.CompilerParams(
            dimension_semantics=("parallel",),        # shards batch tiles across TCs
            vmem_limit_bytes=48 * 1024 * 1024,        # headroom for 2048-row tiles,
        ),                                            # still < v7x 64 MiB physical
        cost_estimate=pl.CostEstimate(
            flops=flops, transcendentals=0, bytes_accessed=bytes_accessed),
    )(x_flat, w0, b0, w1, b1, w2, b2)


def simple_conv_model2(x, prepared):
    """Convenience wrapper matching the PyTorch module's (B, 10) output."""
    return simple_conv_model2_padded(x, prepared)[:, :FC2_OUT]


# ------------------------- Reference + init ----------------------------------

def reference_forward(x, params):
    """Plain-JAX f32 replica of the PyTorch forward (highest precision)."""
    wc, bc, w1, b1, w2, b2 = params
    hp = jax.lax.Precision.HIGHEST
    y = jax.lax.conv_general_dilated(
        x, wc, (1, 1), "VALID",
        dimension_numbers=("NCHW", "OIHW", "NCHW"), precision=hp)
    y = jnp.maximum(y + bc[None, :, None, None], 0.0)
    y = y.reshape(x.shape[0], -1)                       # NCHW flatten: c*64 + h*8 + w
    y = jnp.maximum(jnp.dot(y, w1.T, precision=hp) + b1, 0.0)
    return jnp.dot(y, w2.T, precision=hp) + b2


def init_params(key):
    """Deterministic synthetic parameters with PyTorch-module shapes."""
    ks = jax.random.split(key, 6)
    wc = jax.random.normal(ks[0], (C_OUT, 1, K, K), jnp.float32) * 0.05   # conv1.weight
    bc = jax.random.normal(ks[1], (C_OUT,), jnp.float32) * 0.05           # conv1.bias
    w1 = jax.random.normal(ks[2], (FC1_OUT, FC1_IN), jnp.float32) * 0.05  # fc1.weight
    b1 = jax.random.normal(ks[3], (FC1_OUT,), jnp.float32) * 0.05         # fc1.bias
    w2 = jax.random.normal(ks[4], (FC2_OUT, FC1_OUT), jnp.float32) * 0.05 # fc2.weight
    b2 = jax.random.normal(ks[5], (FC2_OUT,), jnp.float32) * 0.05         # fc2.bias
    return wc, bc, w1, b1, w2, b2


if __name__ == "__main__":
    key = jax.random.PRNGKey(0)
    k_x, k_p = jax.random.split(key)

    B = 2
    x = jax.random.normal(k_x, (B, 1, H, W), jnp.float32)   # NCHW, MNIST-sized
    params = init_params(k_p)

    prepared = prepare_params(params)       # one-time layout prep, outside jit
    fwd = jax.jit(simple_conv_model2)

    out = fwd(x, prepared)
    jax.block_until_ready(out)

    ref = reference_forward(x, params)
    assert out.shape == (B, FC2_OUT) and out.dtype == jnp.float32
    # bf16 inputs with f32 accumulation over the 441-term conv reduction ->
    # expect ~1e-3 absolute error; 2e-2 tolerance still catches layout bugs.
    assert bool(jnp.allclose(out, ref, atol=2e-2, rtol=2e-2)), "mismatch vs reference"

    print("KERNEL_OK")
</pallas_src>

<mosaic_0001>
module attributes {stable_mosaic.version = 11 : i64} {
  func.func @fused_mlp_kernel(%arg0: i32, %arg1: memref<2x784xbf16, #tpu.memory_space<vmem>>, %arg2: memref<784x192xbf16, #tpu.memory_space<vmem>>, %arg3: memref<1x192xf32, #tpu.memory_space<vmem>>, %arg4: memref<192x128xbf16, #tpu.memory_space<vmem>>, %arg5: memref<1x128xf32, #tpu.memory_space<vmem>>, %arg6: memref<128x128xbf16, #tpu.memory_space<vmem>>, %arg7: memref<1x128xf32, #tpu.memory_space<vmem>>, %arg8: memref<2x128xf32, #tpu.memory_space<vmem>>) attributes {dimension_semantics = [#tpu.dimension_semantics<parallel>], iteration_bounds = array<i64: 1>, scalar_prefetch = 0 : i64, scratch_operands = 0 : i64, tpu.core_type = #tpu.core_type<tc>, window_params = [{transform_indices = @transform_0, window_bounds = array<i64: 2, 784>}, {pipeline_mode = #tpu.pipeline_mode<synchronous>, transform_indices = @transform_1, window_bounds = array<i64: 784, 192>}, {pipeline_mode = #tpu.pipeline_mode<synchronous>, transform_indices = @transform_2, window_bounds = array<i64: 1, 192>}, {pipeline_mode = #tpu.pipeline_mode<synchronous>, transform_indices = @transform_3, window_bounds = array<i64: 192, 128>}, {pipeline_mode = #tpu.pipeline_mode<synchronous>, transform_indices = @transform_4, window_bounds = array<i64: 1, 128>}, {pipeline_mode = #tpu.pipeline_mode<synchronous>, transform_indices = @transform_5, window_bounds = array<i64: 128, 128>}, {pipeline_mode = #tpu.pipeline_mode<synchronous>, transform_indices = @transform_6, window_bounds = array<i64: 1, 128>}, {transform_indices = @transform_7, window_bounds = array<i64: 2, 128>}]} {
    %c0 = arith.constant 0 : index
    %c0_0 = arith.constant 0 : index
    %0 = vector.load %arg1[%c0, %c0_0] : memref<2x784xbf16, #tpu.memory_space<vmem>>, vector<2x784xbf16>
    %c0_1 = arith.constant 0 : index
    %c0_2 = arith.constant 0 : index
    %1 = vector.load %arg2[%c0_1, %c0_2] : memref<784x192xbf16, #tpu.memory_space<vmem>>, vector<784x192xbf16>
    %cst = arith.constant dense<0.000000e+00> : vector<2x192xf32>
    %2 = tpu.matmul %0, %1, %cst {dimension_numbers = #tpu.dot_dimension_numbers<[1], [0], [0], [1], [0, 0, 1, 1], [], []>} : vector<2x784xbf16>, vector<784x192xbf16>, vector<2x192xf32> -> vector<2x192xf32>
    %c0_3 = arith.constant 0 : index
    %c0_4 = arith.constant 0 : index
    %3 = vector.load %arg3[%c0_3, %c0_4] : memref<1x192xf32, #tpu.memory_space<vmem>>, vector<1x192xf32>
    %4 = vector.broadcast %3 : vector<1x192xf32> to vector<2x192xf32>
    %5 = arith.addf %2, %4 : vector<2x192xf32>
    %cst_5 = arith.constant 0.000000e+00 : f32
    %6 = vector.broadcast %cst_5 : f32 to vector<2x192xf32>
    %7 = arith.maximumf %5, %6 : vector<2x192xf32>
    %8 = arith.truncf %7 : vector<2x192xf32> to vector<2x192xbf16>
    %c0_6 = arith.constant 0 : index
    %c0_7 = arith.constant 0 : index
    %9 = vector.load %arg4[%c0_6, %c0_7] : memref<192x128xbf16, #tpu.memory_space<vmem>>, vector<192x128xbf16>
    %cst_8 = arith.constant dense<0.000000e+00> : vector<2x128xf32>
    %10 = tpu.matmul %8, %9, %cst_8 {dimension_numbers = #tpu.dot_dimension_numbers<[1], [0], [0], [1], [0, 0, 1, 1], [], []>} : vector<2x192xbf16>, vector<192x128xbf16>, vector<2x128xf32> -> vector<2x128xf32>
    %c0_9 = arith.constant 0 : index
    %c0_10 = arith.constant 0 : index
    %11 = vector.load %arg5[%c0_9, %c0_10] : memref<1x128xf32, #tpu.memory_space<vmem>>, vector<1x128xf32>
    %12 = vector.broadcast %11 : vector<1x128xf32> to vector<2x128xf32>
    %13 = arith.addf %10, %12 : vector<2x128xf32>
    %cst_11 = arith.constant 0.000000e+00 : f32
    %14 = vector.broadcast %cst_11 : f32 to vector<2x128xf32>
    %15 = arith.maximumf %13, %14 : vector<2x128xf32>
    %16 = arith.truncf %15 : vector<2x128xf32> to vector<2x128xbf16>
    %c0_12 = arith.constant 0 : index
    %c0_13 = arith.constant 0 : index
    %17 = vector.load %arg6[%c0_12, %c0_13] : memref<128x128xbf16, #tpu.memory_space<vmem>>, vector<128x128xbf16>
    %cst_14 = arith.constant dense<0.000000e+00> : vector<2x128xf32>
    %18 = tpu.matmul %16, %17, %cst_14 {dimension_numbers = #tpu.dot_dimension_numbers<[1], [0], [0], [1], [0, 0, 1, 1], [], []>} : vector<2x128xbf16>, vector<128x128xbf16>, vector<2x128xf32> -> vector<2x128xf32>
    %c0_15 = arith.constant 0 : index
    %c0_16 = arith.constant 0 : index
    %19 = vector.load %arg7[%c0_15, %c0_16] : memref<1x128xf32, #tpu.memory_space<vmem>>, vector<1x128xf32>
    %20 = vector.broadcast %19 : vector<1x128xf32> to vector<2x128xf32>
    %21 = arith.addf %18, %20 : vector<2x128xf32>
    %c0_17 = arith.constant 0 : index
    %c0_18 = arith.constant 0 : index
    %22 = vector.load %arg8[%c0_17, %c0_18] : memref<2x128xf32, #tpu.memory_space<vmem>>, vector<2x128xf32>
    tpu.vector_store %arg8[%c0_17, %c0_18], %21 {strides = array<i32>} : memref<2x128xf32, #tpu.memory_space<vmem>>, vector<2x128xf32>,
    return
  }
  func.func @transform_0(%arg0: i32) -> (i32, i32) {
    %c0_i32 = arith.constant 0 : i32
    %c0_i32_0 = arith.constant 0 : i32
    return %arg0, %c0_i32 : i32, i32
  }
  func.func @transform_1(%arg0: i32) -> (i32, i32) {
    %c0_i32 = arith.constant 0 : i32
    %c0_i32_0 = arith.constant 0 : i32
    %c0_i32_1 = arith.constant 0 : i32
    return %c0_i32, %c0_i32_0 : i32, i32
  }
  func.func @transform_2(%arg0: i32) -> (i32, i32) {
    %c0_i32 = arith.constant 0 : i32
    %c0_i32_0 = arith.constant 0 : i32
    %c0_i32_1 = arith.constant 0 : i32
    return %c0_i32, %c0_i32_0 : i32, i32
  }
  func.func @transform_3(%arg0: i32) -> (i32, i32) {
    %c0_i32 = arith.constant 0 : i32
    %c0_i32_0 = arith.constant 0 : i32
    %c0_i32_1 = arith.constant 0 : i32
    return %c0_i32, %c0_i32_0 : i32, i32
  }
  func.func @transform_4(%arg0: i32) -> (i32, i32) {
    %c0_i32 = arith.constant 0 : i32
    %c0_i32_0 = arith.constant 0 : i32
    %c0_i32_1 = arith.constant 0 : i32
    return %c0_i32, %c0_i32_0 : i32, i32
  }
  func.func @transform_5(%arg0: i32) -> (i32, i32) {
    %c0_i32 = arith.constant 0 : i32
    %c0_i32_0 = arith.constant 0 : i32
    %c0_i32_1 = arith.constant 0 : i32
    return %c0_i32, %c0_i32_0 : i32, i32
  }
  func.func @transform_6(%arg0: i32) -> (i32, i32) {
    %c0_i32 = arith.constant 0 : i32
    %c0_i32_0 = arith.constant 0 : i32
    %c0_i32_1 = arith.constant 0 : i32
    return %c0_i32, %c0_i32_0 : i32, i32
  }
  func.func @transform_7(%arg0: i32) -> (i32, i32) {
    %c0_i32 = arith.constant 0 : i32
    %c0_i32_0 = arith.constant 0 : i32
    return %arg0, %c0_i32 : i32, i32
  }
}

</mosaic_0001>

<bundles_post_ra>
// kernel: simple_conv_model2.1
= control target key start
LH: loop header
LB: loop body
LE: loop exit
PB: predicated region body
PF: predicated region fallthrough
CT: control target
= control target key end

     0   :  { %vm638_vm0 = vcmask 130048   ;;  %s2413_s0 = inlined_call_operand.vmem [shape: bf16[2,784], index: 0, kind: input, shape index: {}]   ;;  %s2414_s1 = inlined_call_operand.vmem [shape: bf16[784,192], index: 1, kind: input, shape index: {}]   ;;  %s2415_s2 = inlined_call_operand.vmem [shape: f32[1,192], index: 2, kind: input, shape index: {}]   ;;  %s2416_s3 = inlined_call_operand.vmem [shape: bf16[192,128], index: 3, kind: input, shape index: {}]   ;;  %s2417_s4 = inlined_call_operand.vmem [shape: f32[1,128], index: 4, kind: input, shape index: {}]   ;;  %s2418_s5 = inlined_call_operand.vmem [shape: bf16[128,128], index: 5, kind: input, shape index: {}]   ;;  %s2419_s6 = inlined_call_operand.vmem [shape: f32[1,128], index: 6, kind: input, shape index: {}]   ;;  %s2420_s7 = inlined_call_operand.hbm [shape: f32[2,128], index: 7, kind: output, shape index: {}]  }
   0x1   :  { %v1115_v0 = vld [vmem:[%s2414_s1 + $0x70] sm:$0xf]  ;;  %v1547_v1 = vld [vmem:[%s2414_s1 + $0x74] sm:$0xf0]  ;;  %v1107_v11 = vld [vmem:[%s2414_s1 + $0x60] sm:$0xf] }
   0x2   :  { %v1243_v2 = vld [vmem:[%s2414_s1 + $0x170] sm:$0xf]  ;;  %v1116_v3 = vor.u32 %v1547_v1, %v1115_v0  ;;  %v1579_v4 = vld [vmem:[%s2414_s1 + $0x174] sm:$0xf0]  ;;  %v1545_v13 = vld [vmem:[%s2414_s1 + $0x64] sm:$0xf0] }
   0x3   :  { %v1307_v5 = vld [vmem:[%s2414_s1 + $0x1f0] sm:$0xf]  ;;  %v1595_v6 = vld [vmem:[%s2414_s1 + $0x1f4] sm:$0xf0]  ;;  %v1244_v7 = vor.u32 %v1579_v4, %v1243_v2  ;;  %v1235_v14 = vld [vmem:[%s2414_s1 + $0x160] sm:$0xf]  ;;  %v1108_v16 = vor.u32 %v1545_v13, %v1107_v11 }
   0x4   :  { %v1308_v8 = vor.u32 %v1595_v6, %v1307_v5  ;;  %v1179_v9 = vld [vmem:[%s2414_s1 + $0xf0] sm:$0xf]  ;;  %v1563_v10 = vld [vmem:[%s2414_s1 + $0xf4] sm:$0xf0]  ;;  %641 = vmatpush.bf16.msra.mxu0 %v1116_v3  ;;  %v1577_v15 = vld [vmem:[%s2414_s1 + $0x164] sm:$0xf0] }
   0x5   :  { %v1180_v12 = vor.u32 %v1563_v10, %v1179_v9  ;;  %667 = vmatpush.bf16.msra.mxu2 %v1244_v7  ;;  %v1236_v17 = vor.u32 %v1577_v15, %v1235_v14  ;;  %v1299_v18 = vld [vmem:[%s2414_s1 + $0x1e0] sm:$0xf]  ;;  %v1593_v19 = vld [vmem:[%s2414_s1 + $0x1e4] sm:$0xf0]  ;;  %v1099_v23 = vld [vmem:[%s2414_s1 + $0x50] sm:$0xf] }
   0x6   :  { %680 = vmatpush.bf16.msra.mxu3 %v1308_v8  ;;  %v1171_v20 = vld [vmem:[%s2414_s1 + $0xe0] sm:$0xf]  ;;  %v1300_v21 = vor.u32 %v1593_v19, %v1299_v18  ;;  %v1561_v22 = vld [vmem:[%s2414_s1 + $0xe4] sm:$0xf0]  ;;  %v1543_v24 = vld [vmem:[%s2414_s1 + $0x54] sm:$0xf0] }
   0x7   :  { %654 = vmatpush.bf16.msra.mxu1 %v1180_v12  ;;  %v1172_v25 = vor.u32 %v1561_v22, %v1171_v20  ;;  %v1227_v26 = vld [vmem:[%s2414_s1 + $0x150] sm:$0xf]  ;;  %v1575_v27 = vld [vmem:[%s2414_s1 + $0x154] sm:$0xf0]  ;;  %v1100_v29 = vor.u32 %v1543_v24, %v1099_v23  ;;  %v1091_v35 = vld [vmem:[%s2414_s1 + $0x40] sm:$0xf] }
   0x8   :  { %v1291_v28 = vld [vmem:[%s2414_s1 + $0x1d0] sm:$0xf]  ;;  %642 = vmatpush.bf16.msra.mxu0 %v1108_v16  ;;  %v1591_v30 = vld [vmem:[%s2414_s1 + $0x1d4] sm:$0xf0]  ;;  %v1228_v33 = vor.u32 %v1575_v27, %v1227_v26  ;;  %v1541_v36 = vld [vmem:[%s2414_s1 + $0x44] sm:$0xf0] }
   0x9   :  { %v1163_v31 = vld [vmem:[%s2414_s1 + $0xd0] sm:$0xf]  ;;  %v1559_v32 = vld [vmem:[%s2414_s1 + $0xd4] sm:$0xf0]  ;;  %668 = vmatpush.bf16.msra.mxu2 %v1236_v17  ;;  %v1292_v34 = vor.u32 %v1591_v30, %v1291_v28  ;;  %v1219_v37 = vld [vmem:[%s2414_s1 + $0x140] sm:$0xf]  ;;  %v1092_v44 = vor.u32 %v1541_v36, %v1091_v35 }
   0xa   :  { %681 = vmatpush.bf16.msra.mxu3 %v1300_v21  ;;  %v1164_v38 = vor.u32 %v1559_v32, %v1163_v31  ;;  %v1573_v39 = vld [vmem:[%s2414_s1 + $0x144] sm:$0xf0]  ;;  %v1283_v40 = vld [vmem:[%s2414_s1 + $0x1c0] sm:$0xf]  ;;  %v1083_v47 = vld [vmem:[%s2414_s1 + $0x30] sm:$0xf] }
   0xb   :  { %655 = vmatpush.bf16.msra.mxu1 %v1172_v25  ;;  %v1589_v41 = vld [vmem:[%s2414_s1 + $0x1c4] sm:$0xf0]  ;;  %v1155_v42 = vld [vmem:[%s2414_s1 + $0xc0] sm:$0xf]  ;;  %v1220_v45 = vor.u32 %v1573_v39, %v1219_v37  ;;  %v1539_v48 = vld [vmem:[%s2414_s1 + $0x34] sm:$0xf0] }
   0xc   :  { %v1557_v43 = vld [vmem:[%s2414_s1 + $0xc4] sm:$0xf0]  ;;  %643 = vmatpush.bf16.msra.mxu0 %v1100_v29  ;;  %v1284_v46 = vor.u32 %v1589_v41, %v1283_v40  ;;  %v1211_v49 = vld [vmem:[%s2414_s1 + $0x130] sm:$0xf]  ;;  %v1571_v51 = vld [vmem:[%s2414_s1 + $0x134] sm:$0xf0]  ;;  %v1084_v56 = vor.u32 %v1539_v48, %v1083_v47 }
   0xd   :  { %669 = vmatpush.bf16.msra.mxu2 %v1228_v33  ;;  %v1156_v50 = vor.u32 %v1557_v43, %v1155_v42  ;;  %v1275_v52 = vld [vmem:[%s2414_s1 + $0x1b0] sm:$0xf]  ;;  %v1587_v53 = vld [vmem:[%s2414_s1 + $0x1b4] sm:$0xf0]  ;;  %v1212_v57 = vor.u32 %v1571_v51, %v1211_v49  ;;  %v1075_v59 = vld [vmem:[%s2414_s1 + $0x20] sm:$0xf] }
   0xe   :  { %682 = vmatpush.bf16.msra.mxu3 %v1292_v34  ;;  %v1147_v54 = vld [vmem:[%s2414_s1 + $0xb0] sm:$0xf]  ;;  %v1555_v55 = vld [vmem:[%s2414_s1 + $0xb4] sm:$0xf0]  ;;  %v1276_v58 = vor.u32 %v1587_v53, %v1275_v52  ;;  %v1537_v60 = vld [vmem:[%s2414_s1 + $0x24] sm:$0xf0] }
   0xf   :  { %656 = vmatpush.bf16.msra.mxu1 %v1164_v38  ;;  %v1203_v61 = vld [vmem:[%s2414_s1 + $0x120] sm:$0xf]  ;;  %v1148_v62 = vor.u32 %v1555_v55, %v1147_v54  ;;  %v1569_v63 = vld [vmem:[%s2414_s1 + $0x124] sm:$0xf0]  ;;  %v1076_v4 = vor.u32 %v1537_v60, %v1075_v59  ;;  %v1067_v7 = vld [vmem:[%s2414_s1 + $0x10] sm:$0xf] }
  0x10   :  { %644 = vmatpush.bf16.msra.mxu0 %v1092_v44  ;;  %v1267_v0 = vld [vmem:[%s2414_s1 + $0x1a0] sm:$0xf]  ;;  %v1585_v1 = vld [vmem:[%s2414_s1 + $0x1a4] sm:$0xf0]  ;;  %v1204_v5 = vor.u32 %v1569_v63, %v1203_v61  ;;  %v1535_v8 = vld [vmem:[%s2414_s1 + $0x14] sm:$0xf0] }
  0x11   :  { %670 = vmatpush.bf16.msra.mxu2 %v1220_v45  ;;  %v1139_v2 = vld [vmem:[%s2414_s1 + $0xa0] sm:$0xf]  ;;  %v1553_v3 = vld [vmem:[%s2414_s1 + $0xa4] sm:$0xf0]  ;;  %v1268_v6 = vor.u32 %v1585_v1, %v1267_v0  ;;  %v1195_v9 = vld [vmem:[%s2414_s1 + $0x110] sm:$0xf]  ;;  %v1068_v17 = vor.u32 %v1535_v8, %v1067_v7 }
  0x12   :  { %683 = vmatpush.bf16.msra.mxu3 %v1284_v46  ;;  %v1140_v10 = vor.u32 %v1553_v3, %v1139_v2  ;;  %v1567_v11 = vld [vmem:[%s2414_s1 + $0x114] sm:$0xf0]  ;;  %v1259_v12 = vld [vmem:[%s2414_s1 + $0x190] sm:$0xf]  ;;  %v28_v16 = vld [vmem:[%s2413_s0] sm:$0x7f] }
  0x13   :  { %657 = vmatpush.bf16.msra.mxu1 %v1156_v50  ;;  %v1583_v13 = vld [vmem:[%s2414_s1 + $0x194] sm:$0xf0]  ;;  %v1131_v14 = vld [vmem:[%s2414_s1 + $0x90] sm:$0xf]  ;;  %v1059_v18 = vld [vmem:[%s2414_s1] sm:$0xf]  ;;  %v1196_v20 = vor.u32 %v1567_v11, %v1195_v9 }
  0x14   :  { %645 = vmatpush.bf16.msra.mxu0 %v1084_v56  ;;  %v1551_v15 = vld [vmem:[%s2414_s1 + $0x94] sm:$0xf0]  ;;  %v1533_v19 = vld [vmem:[%s2414_s1 + $0x4] sm:$0xf0]  ;;  %134 = vst [vmem:[#allocation1] ss:$9 sm:$0xff] %v28_v16  ;;  %v1260_v21 = vor.u32 %v1583_v13, %v1259_v12 }
  0x15   :  { %671 = vmatpush.bf16.msra.mxu2 %v1212_v57  ;;  %v1187_v22 = vld [vmem:[%s2414_s1 + $0x100] sm:$0xf]  ;;  %v1565_v23 = vld [vmem:[%s2414_s1 + $0x104] sm:$0xf0]  ;;  %v1132_v25 = vor.u32 %v1551_v15, %v1131_v14  ;;  %v1371_v27 = vld [vmem:[%s2414_s1 + $0x270] sm:$0xf]  ;;  %v1060_v32 = vor.u32 %v1533_v19, %v1059_v18 }
  0x16   :  { %684 = vmatpush.bf16.msra.mxu3 %v1276_v58  ;;  %v1251_v24 = vld [vmem:[%s2414_s1 + $0x180] sm:$0xf]  ;;  %v1581_v26 = vld [vmem:[%s2414_s1 + $0x184] sm:$0xf0]  ;;  %v1611_v28 = vld [vmem:[%s2414_s1 + $0x274] sm:$0xf0]  ;;  %v1188_v36 = vor.u32 %v1565_v23, %v1187_v22 }
  0x17   :  { %658 = vmatpush.bf16.msra.mxu1 %v1148_v62  ;;  %v1546_v29 = vld [vmem:[%s2414_s1 + $0x74] sm:$0xf]  ;;  %v1117_v30 = vld [vmem:[%s2414_s1 + $0x78] sm:$0xf0]  ;;  %v1123_v31 = vld [vmem:[%s2414_s1 + $0x80] sm:$0xf]  ;;  %v1252_v37 = vor.u32 %v1581_v26, %v1251_v24  ;;  %v1372_v40 = vor.u32 %v1611_v28, %v1371_v27 }
  0x18   :  { %646 = vmatpush.bf16.msra.mxu0 %v1076_v4  ;;  %v1549_v33 = vld [vmem:[%s2414_s1 + $0x84] sm:$0xf0]  ;;  %v1443_v34 = vld [vmem:[%s2414_s1 + $0x300] sm:$0xf]  ;;  %v1435_v38 = vld [vmem:[%s2414_s1 + $0x2f0] sm:$0xf]  ;;  %v1120_v41 = vor.u32 %v1546_v29, %v1117_v30 }
  0x19   :  { %672 = vmatpush.bf16.msra.mxu2 %v1204_v5  ;;  %v1629_v35 = vld [vmem:[%s2414_s1 + $0x304] sm:$0xf0]  ;;  %v1627_v39 = vld [vmem:[%s2414_s1 + $0x2f4] sm:$0xf0]  ;;  %v1562_v42 = vld [vmem:[%s2414_s1 + $0xf4] sm:$0xf]  ;;  %v1124_v45 = vor.u32 %v1549_v33, %v1123_v31 }
  0x1a   :  { %685 = vmatpush.bf16.msra.mxu3 %v1268_v6  ;;  %v1181_v43 = vld [vmem:[%s2414_s1 + $0xf8] sm:$0xf0]  ;;  %v1363_v44 = vld [vmem:[%s2414_s1 + $0x260] sm:$0xf]  ;;  %v1444_v46 = vor.u32 %v1629_v35, %v1443_v34  ;;  %v1609_v47 = vld [vmem:[%s2414_s1 + $0x264] sm:$0xf0]  ;;  %v1436_v50 = vor.u32 %v1627_v39, %v1435_v38 }
  0x1b   :  { %659 = vmatpush.bf16.msra.mxu1 %v1140_v10  ;;  %v1544_v48 = vld [vmem:[%s2414_s1 + $0x64] sm:$0xf]  ;;  %v1109_v49 = vld [vmem:[%s2414_s1 + $0x68] sm:$0xf0]  ;;  %v1427_v51 = vld [vmem:[%s2414_s1 + $0x2e0] sm:$0xf]  ;;  %v1184_v53 = vor.u32 %v1562_v42, %v1181_v43  ;;  %v1364_v56 = vor.u32 %v1609_v47, %v1363_v44 }
  0x1c   :  { %647 = vmatpush.bf16.msra.mxu0 %v1068_v17  ;;  %v1960_v52 = vld [vmem:[#allocation1 + $0x12] sm:$0xff]  ;;  %v1625_v54 = vld [vmem:[%s2414_s1 + $0x2e4] sm:$0xf0]  ;;  %v1560_v55 = vld [vmem:[%s2414_s1 + $0xe4] sm:$0xf]  ;;  %v1112_v57 = vor.u32 %v1544_v48, %v1109_v49 }
  0x1d   :  { %673 = vmatpush.bf16.msra.mxu2 %v1196_v20  ;;  %v1968_v58 = vld [vmem:[#allocation1] sm:$0xff]  ;;  %v1173_v59 = vld [vmem:[%s2414_s1 + $0xe8] sm:$0xf0]  ;;  %v1355_v60 = vld [vmem:[%s2414_s1 + $0x250] sm:$0xf]  ;;  %v1428_v1 = vor.u32 %v1625_v54, %v1427_v51 }
  0x1e   :  { %686 = vmatpush.bf16.msra.mxu3 %v1260_v21  ;;  %v1607_v61 = vld [vmem:[%s2414_s1 + $0x254] sm:$0xf0]  ;;  %v1542_v62 = vld [vmem:[%s2414_s1 + $0x54] sm:$0xf]  ;;  %v1101_v63 = vld [vmem:[%s2414_s1 + $0x58] sm:$0xf0]  ;;  %v1176_v3 = vor.u32 %v1560_v55, %v1173_v59 }
  0x1f   :  { %660 = vmatpush.bf16.msra.mxu1 %v1132_v25  ;;  %v1986_v0 = vld [vmem:[#allocation1 + $0x1b] sm:$0xff]  ;;  %v1988_v2 = vld [vmem:[#allocation1 + $0x9] sm:$0xff]  ;;  %v1356_v6 = vor.u32 %v1607_v61, %v1355_v60  ;;  %v1104_v7 = vor.u32 %v1542_v62, %v1101_v63  ;;  %v1558_v8 = vld [vmem:[%s2414_s1 + $0xd4] sm:$0xf] }
  0x20   :  { %648 = vmatpush.bf16.msra.mxu0 %v1060_v32  ;;  %v1419_v4 = vld [vmem:[%s2414_s1 + $0x2d0] sm:$0xf]  ;;  %v1623_v5 = vld [vmem:[%s2414_s1 + $0x2d4] sm:$0xf0]  ;;  %v1165_v9 = vld [vmem:[%s2414_s1 + $0xd8] sm:$0xf0] }
  0x21   :  { %674 = vmatpush.bf16.msra.mxu2 %v1188_v36  ;;  %v1347_v10 = vld [vmem:[%s2414_s1 + $0x240] sm:$0xf]  ;;  %v1605_v11 = vld [vmem:[%s2414_s1 + $0x244] sm:$0xf0]  ;;  %v1540_v12 = vld [vmem:[%s2414_s1 + $0x44] sm:$0xf]  ;;  %v1420_v14 = vor.u32 %v1623_v5, %v1419_v4  ;;  %v1168_v15 = vor.u32 %v1558_v8, %v1165_v9 }
  0x22   :  { %687 = vmatpush.bf16.msra.mxu3 %v1252_v37  ;;  %v1093_v13 = vld [vmem:[%s2414_s1 + $0x48] sm:$0xf0]  ;;  %v1411_v16 = vld [vmem:[%s2414_s1 + $0x2c0] sm:$0xf]  ;;  %v1621_v17 = vld [vmem:[%s2414_s1 + $0x2c4] sm:$0xf0]  ;;  %v1348_v18 = vor.u32 %v1605_v11, %v1347_v10 }
  0x23   :  { %661 = vmatpush.bf16.msra.mxu1 %v1124_v45  ;;  %649 = vmatmul.bf16.vlgmr.msra.gmra.mxu0 %v1968_v58  ;;  %v1096_v19 = vor.u32 %v1540_v12, %v1093_v13  ;;  %v1556_v20 = vld [vmem:[%s2414_s1 + $0xc4] sm:$0xf]  ;;  %v1157_v21 = vld [vmem:[%s2414_s1 + $0xc8] sm:$0xf0]  ;;  %v1339_v22 = vld [vmem:[%s2414_s1 + $0x230] sm:$0xf]  ;;  %v1412_v26 = vor.u32 %v1621_v17, %v1411_v16 }
  0x24   :  { %693 = vmatpush.bf16.msrb.mxu0 %v1372_v40  ;;  %675 = vmatmul.bf16.vlgmr.msra.gmra.mxu2 %v1960_v52  ;;  %v1603_v23 = vld [vmem:[%s2414_s1 + $0x234] sm:$0xf0]  ;;  %v1538_v24 = vld [vmem:[%s2414_s1 + $0x34] sm:$0xf]  ;;  %v1085_v25 = vld [vmem:[%s2414_s1 + $0x38] sm:$0xf0]  ;;  %v1160_v27 = vor.u32 %v1556_v20, %v1157_v21 }
  0x25   :  { %726 = vmatpush.bf16.msrb.mxu2 %v1444_v46  ;;  %688 = vmatmul.bf16.vlgmr.msra.gmra.mxu3 %v1986_v0  ;;  %v1403_v28 = vld [vmem:[%s2414_s1 + $0x2b0] sm:$0xf]  ;;  %v1619_v29 = vld [vmem:[%s2414_s1 + $0x2b4] sm:$0xf0]  ;;  %v1340_v30 = vor.u32 %v1603_v23, %v1339_v22  ;;  %v1088_v31 = vor.u32 %v1538_v24, %v1085_v25  ;;  %v1554_v32 = vld [vmem:[%s2414_s1 + $0xb4] sm:$0xf] }
  0x26   :  { %732 = vmatpush.bf16.msrb.mxu3 %v1120_v41  ;;  %662 = vmatmul.bf16.vlgmr.msra.gmra.mxu1 %v1988_v2  ;;  %v1149_v33 = vld [vmem:[%s2414_s1 + $0xb8] sm:$0xf0]  ;;  %v1331_v34 = vld [vmem:[%s2414_s1 + $0x220] sm:$0xf]  ;;  %v1601_v35 = vld [vmem:[%s2414_s1 + $0x224] sm:$0xf0]  ;;  %v1404_v38 = vor.u32 %v1619_v29, %v1403_v28 }
  0x27   :  { %706 = vmatpush.bf16.msrb.mxu1 %v1436_v50  ;;  %v1536_v36 = vld [vmem:[%s2414_s1 + $0x24] sm:$0xf]  ;;  %v1077_v37 = vld [vmem:[%s2414_s1 + $0x28] sm:$0xf0]  ;;  %v1152_v39 = vor.u32 %v1554_v32, %v1149_v33  ;;  %v1395_v40 = vld [vmem:[%s2414_s1 + $0x2a0] sm:$0xf]  ;;  %v1332_v43 = vor.u32 %v1601_v35, %v1331_v34 }
  0x28   :  { %694 = vmatpush.bf16.msrb.mxu0 %v1364_v56  ;;  %v1617_v41 = vld [vmem:[%s2414_s1 + $0x2a4] sm:$0xf0]  ;;  %v2071_v42 = vld [vmem:[#allocation1 + $0x36] sm:$0xff]  ;;  %v1080_v44 = vor.u32 %v1536_v36, %v1077_v37  ;;  %v1552_v45 = vld [vmem:[%s2414_s1 + $0xa4] sm:$0xf] }
  0x29   :  { %745 = vmatpush.bf16.msra.mxu2 %v1184_v53  ;;  %v1141_v46 = vld [vmem:[%s2414_s1 + $0xa8] sm:$0xf0]  ;;  %v1323_v47 = vld [vmem:[%s2414_s1 + $0x210] sm:$0xf]  ;;  %v1599_v48 = vld [vmem:[%s2414_s1 + $0x214] sm:$0xf0]  ;;  %v1396_v51 = vor.u32 %v1617_v41, %v1395_v40 }
  0x2a   :  { %733 = vmatpush.bf16.msrb.mxu3 %v1112_v57  ;;  %v1534_v49 = vld [vmem:[%s2414_s1 + $0x14] sm:$0xf]  ;;  %v1069_v50 = vld [vmem:[%s2414_s1 + $0x18] sm:$0xf0]  ;;  %v1144_v53 = vor.u32 %v1552_v45, %v1141_v46  ;;  %v1387_v54 = vld [vmem:[%s2414_s1 + $0x290] sm:$0xf]  ;;  %v1324_v57 = vor.u32 %v1599_v48, %v1323_v47 }
  0x2b   :  { %707 = vmatpush.bf16.msrb.mxu1 %v1428_v1  ;;  %v1615_v55 = vld [vmem:[%s2414_s1 + $0x294] sm:$0xf0]  ;;  %v1550_v56 = vld [vmem:[%s2414_s1 + $0x94] sm:$0xf]  ;;  %v1072_v59 = vor.u32 %v1534_v49, %v1069_v50  ;;  %v1133_v60 = vld [vmem:[%s2414_s1 + $0x98] sm:$0xf0] }
  0x2c   :  { %695 = vmatpush.bf16.msrb.mxu0 %v1356_v6  ;;  %v1315_v61 = vld [vmem:[%s2414_s1 + $0x200] sm:$0xf]  ;;  %v1597_v62 = vld [vmem:[%s2414_s1 + $0x204] sm:$0xf0]  ;;  %v1532_v63 = vld [vmem:[%s2414_s1 + $0x4] sm:$0xf]  ;;  %v1388_v4 = vor.u32 %v1615_v55, %v1387_v54  ;;  %v1136_v8 = vor.u32 %v1550_v56, %v1133_v60 }
  0x2d   :  { %746 = vmatpush.bf16.msra.mxu2 %v1176_v3  ;;  %v1061_v1 = vld [vmem:[%s2414_s1 + $0x8] sm:$0xf0]  ;;  %v1578_v3 = vld [vmem:[%s2414_s1 + $0x174] sm:$0xf]  ;;  %v1245_v5 = vld [vmem:[%s2414_s1 + $0x178] sm:$0xf0]  ;;  %v1316_v11 = vor.u32 %v1597_v62, %v1315_v61 }
  0x2e   :  { %734 = vmatpush.bf16.msrb.mxu3 %v1104_v7  ;;  %v1610_v6 = vld [vmem:[%s2414_s1 + $0x274] sm:$0xf]  ;;  %v1373_v7 = vld [vmem:[%s2414_s1 + $0x278] sm:$0xf0]  ;;  %v1379_v9 = vld [vmem:[%s2414_s1 + $0x280] sm:$0xf]  ;;  %v1064_v12 = vor.u32 %v1532_v63, %v1061_v1  ;;  %v1248_v16 = vor.u32 %v1578_v3, %v1245_v5 }
  0x2f   :  { %708 = vmatpush.bf16.msrb.mxu1 %v1420_v14  ;;  %v1613_v10 = vld [vmem:[%s2414_s1 + $0x284] sm:$0xf0]  ;;  %v1548_v13 = vld [vmem:[%s2414_s1 + $0x84] sm:$0xf]  ;;  %v1125_v14 = vld [vmem:[%s2414_s1 + $0x88] sm:$0xf0]  ;;  %v1376_v17 = vor.u32 %v1610_v6, %v1373_v7 }
  0x30   :  { %696 = vmatpush.bf16.msrb.mxu0 %v1348_v18  ;;  %v1309_v18 = vld [vmem:[%s2414_s1 + $0x1f8] sm:$0xf0]  ;;  %v1380_v21 = vor.u32 %v1613_v10, %v1379_v9  ;;  %v1576_v22 = vld [vmem:[%s2414_s1 + $0x164] sm:$0xf]  ;;  %v1237_v23 = vld [vmem:[%s2414_s1 + $0x168] sm:$0xf0]  ;;  %v1128_v24 = vor.u32 %v1548_v13, %v1125_v14 }
  0x31   :  { %747 = vmatpush.bf16.msra.mxu2 %v1168_v15  ;;  %v1594_v15 = vld [vmem:[%s2414_s1 + $0x1f4] sm:$0xf]  ;;  %v1437_v20 = vld [vmem:[%s2414_s1 + $0x2f8] sm:$0xf0]  ;;  %v1608_v25 = vld [vmem:[%s2414_s1 + $0x264] sm:$0xf] }
  0x32   :  { %735 = vmatpush.bf16.msrb.mxu3 %v1096_v19  ;;  %v1626_v19 = vld [vmem:[%s2414_s1 + $0x2f4] sm:$0xf]  ;;  %v1312_v28 = vor.u32 %v1594_v15, %v1309_v18  ;;  %v1301_v32 = vld [vmem:[%s2414_s1 + $0x1e8] sm:$0xf0]  ;;  %v1624_v33 = vld [vmem:[%s2414_s1 + $0x2e4] sm:$0xf] }
  0x33   :  { %709 = vmatpush.bf16.msrb.mxu1 %v1412_v26  ;;  %v1365_v26 = vld [vmem:[%s2414_s1 + $0x268] sm:$0xf0]  ;;  %v1440_v29 = vor.u32 %v1626_v19, %v1437_v20  ;;  %v1574_v37 = vld [vmem:[%s2414_s1 + $0x154] sm:$0xf]  ;;  %v1357_v40 = vld [vmem:[%s2414_s1 + $0x258] sm:$0xf0] }
  0x34   :  { %697 = vmatpush.bf16.msrb.mxu0 %v1340_v30  ;;  %1449 = vmatmul.msk.bf16.vlgmr.msrb.gmra.mxu2 %vm638_vm0, %v2071_v42  ;;  %v1592_v30 = vld [vmem:[%s2414_s1 + $0x1e4] sm:$0xf]  ;;  %v1429_v34 = vld [vmem:[%s2414_s1 + $0x2e8] sm:$0xf0]  ;;  %v1368_v36 = vor.u32 %v1608_v25, %v1365_v26  ;;  %v1293_v46 = vld [vmem:[%s2414_s1 + $0x1d8] sm:$0xf0] }
  0x35   :  { %748 = vmatpush.bf16.msra.mxu2 %v1160_v27  ;;  %v2165_v27 = vld [vmem:[#allocation1 + $0x24] sm:$0xff]  ;;  %v2179_v35 = vld [vmem:[#allocation1 + $0x2d] sm:$0xff]  ;;  %v1304_v41 = vor.u32 %v1592_v30, %v1301_v32  ;;  %v1421_v48 = vld [vmem:[%s2414_s1 + $0x2d8] sm:$0xf0] }
  0x36   :  { %736 = vmatpush.bf16.msrb.mxu3 %v1088_v31  ;;  %v1240_v31 = vor.u32 %v1576_v22, %v1237_v23  ;;  %v1622_v47 = vld [vmem:[%s2414_s1 + $0x2d4] sm:$0xf]  ;;  %v1572_v50 = vld [vmem:[%s2414_s1 + $0x144] sm:$0xf]  ;;  %v1349_v54 = vld [vmem:[%s2414_s1 + $0x248] sm:$0xf0] }
  0x37   :  { %710 = vmatpush.bf16.msrb.mxu1 %v1404_v38  ;;  %v1229_v38 = vld [vmem:[%s2414_s1 + $0x158] sm:$0xf0]  ;;  %v1424_v55 = vor.u32 %v1622_v47, %v1421_v48  ;;  %v1588_v56 = vld [vmem:[%s2414_s1 + $0x1c4] sm:$0xf] }
  0x38   :  { %698 = vmatpush.bf16.msrb.mxu0 %v1332_v43  ;;  %v1432_v43 = vor.u32 %v1624_v33, %v1429_v34  ;;  %v1232_v45 = vor.u32 %v1574_v37, %v1229_v38 }
  0x39   :  { %749 = vmatpush.bf16.msra.mxu2 %v1152_v39  ;;  %v1606_v39 = vld [vmem:[%s2414_s1 + $0x254] sm:$0xf] }
  0x3a   :  { %737 = vmatpush.bf16.msrb.mxu3 %v1080_v44  ;;  %v1590_v44 = vld [vmem:[%s2414_s1 + $0x1d4] sm:$0xf]  ;;  %v1360_v49 = vor.u32 %v1606_v39, %v1357_v40 }
  0x3b   :  { %711 = vmatpush.bf16.msrb.mxu1 %v1396_v51  ;;  %v1221_v51 = vld [vmem:[%s2414_s1 + $0x148] sm:$0xf0] }
  0x3c   :  { %699 = vmatpush.bf16.msrb.mxu0 %v1324_v57 }
  0x3d   :  { %750 = vmatpush.bf16.msra.mxu2 %v1144_v53  ;;  %v1604_v53 = vld [vmem:[%s2414_s1 + $0x244] sm:$0xf] }
  0x3e   :  { %738 = vmatpush.bf16.msrb.mxu3 %v1072_v59 }
  0x3f   :  { %712 = vmatpush.bf16.msrb.mxu1 %v1388_v4 }
  0x40   :  { %700 = vmatpush.bf16.msrb.mxu0 %v1316_v11 }
  0x41   :  { %751 = vmatpush.bf16.msra.mxu2 %v1136_v8 }
  0x42   :  { %739 = vmatpush.bf16.msrb.mxu3 %v1064_v12 }
  0x43   :  { %713 = vmatpush.bf16.msrb.mxu1 %v1380_v21  ;;  %701 = vmatmul.bf16.vlgmr.msrb.gmra.mxu0 %v2165_v27 }
  0x44   :  { %758 = vmatpush.bf16.msra.mxu0 %v1248_v16 }
  0x45   :  { %752 = vmatpush.bf16.msra.mxu2 %v1128_v24  ;;  %740 = vmatmul.bf16.vlgmr.msrb.gmra.mxu3 %v1968_v58 }
  0x46   :  { %784 = vmatpush.bf16.msra.mxu3 %v1376_v17  ;;  %714 = vmatmul.bf16.vlgmr.msrb.gmra.mxu1 %v2179_v35 }
  0x47   :  { %771 = vmatpush.bf16.msra.mxu1 %v1312_v28 }
  0x48   :  { %759 = vmatpush.bf16.msra.mxu0 %v1240_v31  ;;  %753 = vmatmul.bf16.vlgmr.msra.gmra.mxu2 %v1988_v2  ;;  %v1296_v2 = vor.u32 %v1590_v44, %v1293_v46 }
  0x49   :  { %797 = vmatpush.bf16.msrb.mxu2 %v1440_v29 }
  0x4a   :  { %785 = vmatpush.bf16.msra.mxu3 %v1368_v36 }
  0x4b   :  { %772 = vmatpush.bf16.msra.mxu1 %v1304_v41 }
  0x4d   :  { %798 = vmatpush.bf16.msrb.mxu2 %v1432_v43 }
  0x4e   :  { %12 = vsyncpa [#allocation3], 0  ;;  %760 = vmatpush.bf16.msra.mxu0 %v1232_v45  ;;  %v1224_v57 = vor.u32 %v1572_v50, %v1221_v51  ;;  %v1285_v59 = vld [vmem:[%s2414_s1 + $0x1c8] sm:$0xf0]  ;;  %v1620_v60 = vld [vmem:[%s2414_s1 + $0x2c4] sm:$0xf]  ;;  %786 = vmatpush.bf16.msra.mxu3 %v1360_v49  ;;  %v1352_v61 = vor.u32 %v1604_v53, %v1349_v54 }
  0x4f   :  { %v1413_v58 = vld [vmem:[%s2414_s1 + $0x2c8] sm:$0xf0]  ;;  %v1570_v62 = vld [vmem:[%s2414_s1 + $0x134] sm:$0xf]  ;;  %v1213_v63 = vld [vmem:[%s2414_s1 + $0x138] sm:$0xf0]  ;;  %773 = vmatpush.bf16.msra.mxu1 %v1296_v2  ;;  %v1288_v4 = vor.u32 %v1588_v56, %v1285_v59 }
  0x50   :  { %v1602_v1 = vld [vmem:[%s2414_s1 + $0x234] sm:$0xf]  ;;  %v1341_v3 = vld [vmem:[%s2414_s1 + $0x238] sm:$0xf0]  ;;  %v1416_v5 = vor.u32 %v1620_v60, %v1413_v58  ;;  %v1216_v7 = vor.u32 %v1570_v62, %v1213_v63  ;;  %v1568_v12 = vld [vmem:[%s2414_s1 + $0x124] sm:$0xf] }
  0x51   :  { %799 = vmatpush.bf16.msrb.mxu2 %v1424_v55  ;;  %v1586_v6 = vld [vmem:[%s2414_s1 + $0x1b4] sm:$0xf]  ;;  %v1277_v8 = vld [vmem:[%s2414_s1 + $0x1b8] sm:$0xf0]  ;;  %v1344_v11 = vor.u32 %v1602_v1, %v1341_v3  ;;  %v1205_v13 = vld [vmem:[%s2414_s1 + $0x128] sm:$0xf0] }
  0x52   :  { %761 = vmatpush.bf16.msra.mxu0 %v1224_v57  ;;  %v1618_v9 = vld [vmem:[%s2414_s1 + $0x2b4] sm:$0xf]  ;;  %v1405_v10 = vld [vmem:[%s2414_s1 + $0x2b8] sm:$0xf0]  ;;  %787 = vmatpush.bf16.msra.mxu3 %v1352_v61  ;;  %v1600_v14 = vld [vmem:[%s2414_s1 + $0x224] sm:$0xf]  ;;  %v1280_v16 = vor.u32 %v1586_v6, %v1277_v8  ;;  %v1208_v19 = vor.u32 %v1568_v12, %v1205_v13 }
  0x53   :  { %v1333_v15 = vld [vmem:[%s2414_s1 + $0x228] sm:$0xf0]  ;;  %774 = vmatpush.bf16.msra.mxu1 %v1288_v4  ;;  %v1408_v17 = vor.u32 %v1618_v9, %v1405_v10  ;;  %v1584_v18 = vld [vmem:[%s2414_s1 + $0x1a4] sm:$0xf]  ;;  %v1566_v24 = vld [vmem:[%s2414_s1 + $0x114] sm:$0xf] }
  0x54   :  { %v1269_v20 = vld [vmem:[%s2414_s1 + $0x1a8] sm:$0xf0]  ;;  %v1616_v21 = vld [vmem:[%s2414_s1 + $0x2a4] sm:$0xf]  ;;  %v1336_v23 = vor.u32 %v1600_v14, %v1333_v15  ;;  %v1197_v25 = vld [vmem:[%s2414_s1 + $0x118] sm:$0xf0] }
  0x55   :  { %800 = vmatpush.bf16.msrb.mxu2 %v1416_v5  ;;  %v1397_v22 = vld [vmem:[%s2414_s1 + $0x2a8] sm:$0xf0]  ;;  %v1598_v26 = vld [vmem:[%s2414_s1 + $0x214] sm:$0xf]  ;;  %v1325_v28 = vld [vmem:[%s2414_s1 + $0x218] sm:$0xf0]  ;;  %v1272_v29 = vor.u32 %v1584_v18, %v1269_v20  ;;  %v1200_v32 = vor.u32 %v1566_v24, %v1197_v25 }
  0x56   :  { %762 = vmatpush.bf16.msra.mxu0 %v1216_v7  ;;  %788 = vmatpush.bf16.msra.mxu3 %v1344_v11  ;;  %v1400_v30 = vor.u32 %v1616_v21, %v1397_v22  ;;  %v1582_v31 = vld [vmem:[%s2414_s1 + $0x194] sm:$0xf]  ;;  %v1261_v33 = vld [vmem:[%s2414_s1 + $0x198] sm:$0xf0]  ;;  %v1328_v37 = vor.u32 %v1598_v26, %v1325_v28  ;;  %v1564_v38 = vld [vmem:[%s2414_s1 + $0x104] sm:$0xf] }
  0x57   :  { %775 = vmatpush.bf16.msra.mxu1 %v1280_v16  ;;  %v1614_v34 = vld [vmem:[%s2414_s1 + $0x294] sm:$0xf]  ;;  %v1389_v36 = vld [vmem:[%s2414_s1 + $0x298] sm:$0xf0]  ;;  %v1189_v39 = vld [vmem:[%s2414_s1 + $0x108] sm:$0xf0]  ;;  %v1264_v43 = vor.u32 %v1582_v31, %v1261_v33 }
  0x58   :  { %v1596_v40 = vld [vmem:[%s2414_s1 + $0x204] sm:$0xf]  ;;  %v1317_v41 = vld [vmem:[%s2414_s1 + $0x208] sm:$0xf0]  ;;  %v1392_v44 = vor.u32 %v1614_v34, %v1389_v36  ;;  %v1192_v45 = vor.u32 %v1564_v38, %v1189_v39  ;;  %v1637_v56 = vld [vmem:[%s2416_s3 + $0x38] sm:$0xff]  ;;  %vm927_vm1 = vcmask 523264  }
  0x59   :  { %801 = vmatpush.bf16.msrb.mxu2 %v1408_v17  ;;  %v1580_v46 = vld [vmem:[%s2414_s1 + $0x184] sm:$0xf]  ;;  %v1253_v47 = vld [vmem:[%s2414_s1 + $0x188] sm:$0xf0]  ;;  %v1320_v48 = vor.u32 %v1596_v40, %v1317_v41  ;;  %v127_v62 = vld [vmem:[%s2415_s2] sm:$0x3] }
  0x5a   :  { %763 = vmatpush.bf16.msra.mxu0 %v1208_v19  ;;  %789 = vmatpush.bf16.msra.mxu3 %v1336_v23  ;;  %v1612_v49 = vld [vmem:[%s2414_s1 + $0x284] sm:$0xf]  ;;  %v1381_v50 = vld [vmem:[%s2414_s1 + $0x288] sm:$0xf0]  ;;  %v1256_v54 = vor.u32 %v1580_v46, %v1253_v47  ;;  %v129_v4 = vperm.slane %v127_v62, 0  ;;  %v1641_v20 = vld [vmem:[%s2416_s3 + $0x58] sm:$0xff] }
  0x5b   :  { %776 = vmatpush.bf16.msra.mxu1 %v1272_v29  ;;  %v1628_v51 = vld [vmem:[%s2414_s1 + $0x304] sm:$0xf]  ;;  %v1445_v53 = vld [vmem:[%s2414_s1 + $0x308] sm:$0xf0]  ;;  %v1384_v2 = vor.u32 %v1612_v49, %v1381_v50  ;;  %v1640_v25 = vld [vmem:[%s2416_s3 + $0x50] sm:$0xff]  ;;  %v130_v33 = vperm.slane %v127_v62, 1 }
  0x5c   :  { %v1448_v55 = vor.u32 %v1628_v51, %v1445_v53  ;;  %v1631_v57 = vld [vmem:[%s2416_s3 + $0x8] sm:$0xff]  ;;  %v1630_v58 = vld [vmem:[%s2416_s3] sm:$0xff]  ;;  %s1679_s8 = smov [#allocation2]   ;;  %s1048_s11 = sshll.u32 %s2420_s7, 4  ;;  %s1049_s11 = int_to_ptr.hbm [resolvable:$true] %s1048_s11 }
  0x5d   :  { %802 = vmatpush.bf16.msrb.mxu2 %v1400_v30  ;;  %v1639_v28 = vld [vmem:[%s2416_s3 + $0x48] sm:$0xff]  ;;  %v1638_v30 = vld [vmem:[%s2416_s3 + $0x40] sm:$0xff]  ;;  %s1046_s9 = sshll.u32 %s1679_s8, 4  ;;  %s1047_s9 = int_to_ptr.vmem [resolvable:$true] %s1046_s9 }
  0x5e   :  { %764 = vmatpush.bf16.msra.mxu0 %v1200_v32  ;;  %790 = vmatpush.bf16.msra.mxu3 %v1328_v37 }
  0x5f   :  { %777 = vmatpush.bf16.msra.mxu1 %v1264_v43 }
  0x61   :  { %803 = vmatpush.bf16.msrb.mxu2 %v1392_v44 }
  0x62   :  { %765 = vmatpush.bf16.msra.mxu0 %v1192_v45  ;;  %791 = vmatpush.bf16.msra.mxu3 %v1320_v48 }
  0x63   :  { %778 = vmatpush.bf16.msra.mxu1 %v1256_v54  ;;  %v1649_v54 = vld [vmem:[%s2418_s5 + $0x38] sm:$0xff] }
  0x65   :  { %766 = vmatmul.bf16.vlgmr.msra.gmra.mxu0 %v1960_v52  ;;  %792 = vmatmul.bf16.vlgmr.msra.gmra.mxu3 %v2165_v27  ;;  %v1636_v52 = vld [vmem:[%s2416_s3 + $0x30] sm:$0xff]  ;;  %v1635_v27 = vld [vmem:[%s2416_s3 + $0x28] sm:$0xff] }
  0x66   :  { %804 = vmatpush.bf16.msrb.mxu2 %v1384_v2  ;;  %779 = vmatmul.bf16.vlgmr.msra.gmra.mxu1 %v1986_v0  ;;  %v1634_v0 = vld [vmem:[%s2416_s3 + $0x20] sm:$0xff]  ;;  %v1648_v2 = vld [vmem:[%s2418_s5 + $0x30] sm:$0xff] }
  0x67   :  { %931 = vmatpush.bf16.msrb.mxu1 %v1637_v56  ;;  %948 = vmatpush.bf16.msrb.mxu3 %v1641_v20  ;;  %v1646_v56 = vld [vmem:[%s2418_s5 + $0x20] sm:$0xff] }
  0x68   :  { %1027 = vmatpush.bf16.msrb.mxu0 %v1649_v54 }
  0x69   :  { %805 = vmatmul.bf16.vlgmr.msrb.gmra.mxu2 %v2179_v35  ;;  %v1632_v35 = vld [vmem:[%s2416_s3 + $0x10] sm:$0xff] }
  0x6a   :  { %817 = vmatpush.bf16.msra.mxu2 %v1448_v55  ;;  %v1647_v55 = vld [vmem:[%s2418_s5 + $0x28] sm:$0xff] }
  0x6b   :  { %932 = vmatpush.bf16.msrb.mxu1 %v1636_v52  ;;  %949 = vmatpush.bf16.msrb.mxu3 %v1640_v25  ;;  %v1645_v52 = vld [vmem:[%s2418_s5 + $0x18] sm:$0xff] }
  0x6c   :  { %1028 = vmatpush.bf16.msrb.mxu0 %v1648_v2 }
  0x6f   :  { %933 = vmatpush.bf16.msrb.mxu1 %v1635_v27  ;;  %950 = vmatpush.bf16.msrb.mxu3 %v1639_v28  ;;  %v1644_v27 = vld [vmem:[%s2418_s5 + $0x10] sm:$0xff] }
  0x70   :  { %1029 = vmatpush.bf16.msrb.mxu0 %v1647_v55 }
  0x73   :  { %934 = vmatpush.bf16.msrb.mxu1 %v1634_v0  ;;  %951 = vmatpush.bf16.msrb.mxu3 %v1638_v30 }
  0x74   :  { %1030 = vmatpush.bf16.msrb.mxu0 %v1646_v56 }
  0x78   :  { %1031 = vmatpush.bf16.msrb.mxu0 %v1645_v52 }
  0x79   :  { %1450 = vmatmul.msk.bf16.vlgmr.msra.gmra.mxu2 %vm638_vm0, %v2071_v42  ;;  %v1633_v42 = vld [vmem:[%s2416_s3 + $0x18] sm:$0xff] }
  0x7a   :  { %935 = vmatpush.bf16.msrb.mxu1 %v1633_v42 }
  0x7c   :  { %1032 = vmatpush.bf16.msrb.mxu0 %v1644_v27 }
  0x7e   :  { %936 = vmatpush.bf16.msrb.mxu1 %v1632_v35  ;;  %v1643_v35 = vld [vmem:[%s2418_s5 + $0x8] sm:$0xff] }
  0x80   :  { %1033 = vmatpush.bf16.msrb.mxu0 %v1643_v35 }
  0x82   :  { %937 = vmatpush.bf16.msrb.mxu1 %v1631_v57  ;;  %v1642_v57 = vld [vmem:[%s2418_s5] sm:$0xff] }
  0x84   :  { %1034 = vmatpush.bf16.msrb.mxu0 %v1642_v57 }
  0x86   :  { %938 = vmatpush.bf16.msrb.mxu1 %v1630_v58 }
  0xa0   :  { %v650_v59 = vpop.f32.mrf.mxu0 }
  0xa1   :  { %v651_v6 = vadd.f32 %v650_v59, %v129_v4  ;;  %v1651_v59 = vld [vmem:[%s2417_s4] ss:$0 sm:$0xff] }
  0xa3   :  { %v663_v60 = vpop.f32.mrf.mxu1 }
  0xa4   :  { %v664_v8 = vadd.f32 %v663_v60, %v651_v6 }
  0xa7   :  { %v676_v61 = vpop.f32.mrf.mxu2 }
  0xa8   :  { %v689_v63 = vpop.f32.mrf.mxu3  ;;  %v652_v1 = vpop.f32.mrf.mxu0  ;;  %v677_v10 = vadd.f32 %v676_v61, %v664_v8 }
  0xaa   :  { %v690_v11 = vadd.f32 %v689_v63, %v677_v10 }
  0xab   :  { %v665_v3 = vpop.f32.mrf.mxu1 }
  0xac   :  { %v1652_v3 = vld [vmem:[%s2419_s6] ss:$0 sm:$0xff] }
  0xaf   :  { %v678_v5 = vpop.f32.mrf.mxu2 }
  0xb0   :  { %v691_v7 = vpop.f32.mrf.mxu3 }
  0xb7   :  { %v728_v9 = vpop.f32.mrf.mxu2 }
  0xbf   :  { %v730_v14 = vpop.f32.mrf.mxu2 }
  0xc0   :  { %v702_v12 = vpop.f32.mrf.mxu0 }
  0xc1   :  { %v703_v13 = vadd.f32 %v702_v12, %v690_v11 }
  0xc3   :  { %v715_v15 = vpop.f32.mrf.mxu1 }
  0xc4   :  { %v716_v16 = vadd.f32 %v715_v15, %v703_v13 }
  0xc6   :  { %v729_v17 = vadd.f32 %v728_v9, %v716_v16 }
  0xc8   :  { %v823_v18 = vmax.f32 %v729_v17, 0.0  ;;  %v704_v19 = vpop.f32.mrf.mxu0  ;;  %v741_v23 = vpop.f32.mrf.mxu3 }
  0xc9   :  { %v742_v37 = vadd.f32 %v741_v23, %v130_v33 }
  0xca   :  { %v825_v21 = vpack.c.bf16 %v823_v18, %v823_v18 }
  0xcb   :  { %v754_v22 = vpop.f32.mrf.mxu2  ;;  %v717_v24 = vpop.f32.mrf.mxu1 }
  0xcc   :  { %939 = vmatmul.bf16.vlgmr.msrb.gmra.mxu1 %v825_v21  ;;  %v755_v40 = vadd.f32 %v754_v22, %v742_v37 }
  0xd0   :  { %v743_v29 = vpop.f32.mrf.mxu3 }
  0xd3   :  { %v756_v26 = vpop.f32.mrf.mxu2 }
  0xe2   :  { %v767_v31 = vpop.f32.mrf.mxu0 }
  0xe3   :  { %v780_v32 = vpop.f32.mrf.mxu1  ;;  %v768_v41 = vadd.f32 %v767_v31, %v755_v40 }
  0xe5   :  { %v781_v45 = vadd.f32 %v780_v32, %v768_v41 }
  0xe8   :  { %v793_v34 = vpop.f32.mrf.mxu3 }
  0xe9   :  { %v794_v46 = vadd.f32 %v793_v34, %v781_v45 }
  0xea   :  { %v769_v36 = vpop.f32.mrf.mxu0 }
  0xeb   :  { %v782_v39 = vpop.f32.mrf.mxu1 }
  0xec   :  { %v806_v38 = vpop.f32.mrf.mxu2 }
  0xed   :  { %v807_v47 = vadd.f32 %v806_v38, %v794_v46 }
  0xf0   :  { %v795_v43 = vpop.f32.mrf.mxu3 }
  0xf4   :  { %v808_v44 = vpop.f32.mrf.mxu2 }
  0xfc   :  { %v819_v48 = vpop.f32.mrf.mxu2 }
  0xfd   :  { %v820_v49 = vadd.f32 %v819_v48, %v807_v47 }
  0xff   :  { %v824_v50 = vmax.f32 %v820_v49, 0.0 }
 0x101   :  { %v826_v51 = vpack.c.bf16 %v824_v50, %v824_v50 }
 0x103   :  { %1499 = vmatmul.msk.bf16.vlgmr.msrb.gmra.mxu3 %vm927_vm1, %v826_v51 }
 0x104   :  { %v821_v53 = vpop.f32.mrf.mxu2 }
 0x149   :  { %v940_v0 = vpop.f32.mrf.mxu1 }
 0x14a   :  { %v941_v60 = vadd.f32 %v1651_v59, %v940_v0 }
 0x151   :  { %v942_v42 = vpop.f32.mrf.mxu1 }
 0x186   :  { %v953_v58 = vpop.f32.mrf.mxu3 }
 0x187   :  { %v954_v61 = vadd.f32 %v953_v58, %v941_v60 }
 0x189   :  { %v957_v62 = vmax.f32 %v954_v61, 0.0 }
 0x18b   :  { %v958_v63 = vpack.c.bf16 %v957_v62, %v957_v62 }
 0x18d   :  { %1035 = vmatmul.bf16.vlgmr.msrb.gmra.mxu0 %v958_v63 }
 0x18e   :  { %v955_v1 = vpop.f32.mrf.mxu3 }
 0x20a   :  { %v1036_v4 = vpop.f32.mrf.mxu0 }
 0x20b   :  { %v1037_v5 = vadd.f32 %v1652_v3, %v1036_v4 }
 0x20d   :  { %1040 = vst [vmem:[#allocation2] sm:$0x3] %v1037_v5 }
 0x20e   :  { %1051 = dma.vmem_to_hbm [thread:$0]  %s1047_s9, 32, %s1049_s11, [#allocation3]  }
 0x212   :  { %v1038_v6 = vpop.f32.mrf.mxu0 }
 0x213   :  { %1677 = dma.done.wait [#allocation3], 32  }
 0x214   :  { %1678 = vsyncadd [#allocation3], 4294967264 }
 0x215   :  { %1056 = vsyncpa [#allocation3], 1 }

</bundles_post_ra>
